<compile_context>
chip_gen: v6e
topology: v6e:2x2x1
jax: 0.10.0
libtpu: 0.0.40
codegen_flags: <defaults>
</compile_context>

<pallas_src>
import math

import jax
import jax.numpy as jnp
from jax.experimental import pallas as pl
from jax.experimental.pallas import tpu as pltpu


def _round_up(n, m):
    return ((n + m - 1) // m) * m


def _sinusoidal_kernel(x_ref, w_ref, p_ref, o_ref):
    # x_ref: (TB, 1)        f32 -- timesteps
    # w_ref: (1, out_dim)   f32 -- [0, 2*pi*w (sin lanes), 2*pi*w (cos lanes)]
    # p_ref: (1, out_dim)   f32 -- [0, 0      (sin lanes), pi/2   (cos lanes)]
    # o_ref: (TB, out_dim)  f32 -- [x, sin(2*pi*w*x), cos(2*pi*w*x)]
    x = x_ref[...]                                        # (TB, 1)
    theta = x * w_ref[...] + p_ref[...]                   # (TB, out_dim)
    emb = jnp.sin(theta)                                  # cos via sin(t+pi/2)
    lane = jax.lax.broadcasted_iota(jnp.int32, theta.shape, dimension=1)
    o_ref[...] = jnp.where(lane == 0, x, emb).astype(o_ref.dtype)


def _reference(x, weights):
    # Pure-JAX reference (identical to the PyTorch forward).
    x2 = x[:, None]
    freqs = x2 * weights[None, :] * 2.0 * math.pi
    return jnp.concatenate([x2, jnp.sin(freqs), jnp.cos(freqs)], axis=-1)


def random_or_learned_sinusoidal_pos_emb(x, weights, *, use_pallas=None,
                                         block_rows=2048):
    """x: (B,) timesteps, weights: (half_dim,) -> (B, 1 + 2*half_dim) f32."""
    assert x.ndim == 1
    assert weights.ndim == 1
    b = x.shape[0]
    half_dim = weights.shape[0]
    out_dim = 1 + 2 * half_dim

    if use_pallas is None:
        # Fixed pallas_call overhead dwarfs the work at tiny B; XLA fuses the
        # reference into one small fusion anyway.
        use_pallas = b >= 512
    if not use_pallas:
        return _reference(x.astype(jnp.float32), weights.astype(jnp.float32))

    # ---- Row tiling: pad only to a sublane multiple; ragged last block. ----
    block_rows = max(8, _round_up(block_rows, 8))
    b_pad = _round_up(b, 8)
    if b_pad <= block_rows:
        # Large-but-single-tile batches get split into two grid steps so the
        # "parallel" axis can feed both TensorCores (v7x megacore); tiny
        # batches stay at one step (extra step = pure overhead).
        tb = _round_up(pl.cdiv(b_pad, 2), 8) if b_pad >= 512 else b_pad
    else:
        tb = block_rows
    grid = pl.cdiv(b_pad, tb)   # last block may be ragged; OOB stores dropped

    # ---- Constant rows: hoist 2*pi, encode cos as a pi/2 phase shift. ----
    w_scaled = weights.astype(jnp.float32) * (2.0 * math.pi)
    w_row = jnp.zeros((1, out_dim), jnp.float32)
    w_row = w_row.at[0, 1:1 + half_dim].set(w_scaled)
    w_row = w_row.at[0, 1 + half_dim:out_dim].set(w_scaled)
    p_row = jnp.zeros((1, out_dim), jnp.float32)
    p_row = p_row.at[0, 1 + half_dim:out_dim].set(0.5 * math.pi)

    x2 = x.astype(jnp.float32).reshape(b, 1)
    if b_pad != b:
        x2 = jnp.pad(x2, ((0, b_pad - b), (0, 0)))

    out = pl.pallas_call(
        _sinusoidal_kernel,
        out_shape=jax.ShapeDtypeStruct((b_pad, out_dim), jnp.float32),
        grid=(grid,),
        in_specs=[
            pl.BlockSpec((tb, 1), lambda i: (i, 0)),
            pl.BlockSpec((1, out_dim), lambda i: (0, 0)),
            pl.BlockSpec((1, out_dim), lambda i: (0, 0)),
        ],
        out_specs=pl.BlockSpec((tb, out_dim), lambda i: (i, 0)),
        compiler_params=pltpu.CompilerParams(
            dimension_semantics=("parallel",)),
        cost_estimate=pl.CostEstimate(
            flops=2 * b_pad * out_dim,
            transcendentals=b_pad * out_dim,
            bytes_accessed=4 * (b_pad + 2 * out_dim + b_pad * out_dim)),
    )(x2, w_row, p_row)

    if b_pad != b:
        out = out[:b]
    return out


if __name__ == "__main__":
    dim = 16                      # must be even; half_dim = 8
    half_dim = dim // 2

    key = jax.random.PRNGKey(0)
    kx, kw, kx_big = jax.random.split(key, 3)

    # Module parameter (PyTorch __init__: torch.randn(half_dim)).
    weights = jax.random.normal(kw, (half_dim,), dtype=jnp.float32)

    # --- Small case (typical module usage): force the Pallas path.
    batch = 8
    x = jax.random.uniform(kx, (batch,), dtype=jnp.float32)
    out = jax.block_until_ready(
        random_or_learned_sinusoidal_pos_emb(x, weights, use_pallas=True))
    ref = _reference(x, weights)
    assert out.shape == (batch, 1 + dim), out.shape
    assert jnp.allclose(out, ref, atol=1e-4, rtol=1e-4), float(
        jnp.max(jnp.abs(out - ref)))

    # --- Larger case: 2-step "parallel" grid + row-pad/slice (1118 % 8 != 0).
    batch_big = 1118
    x_big = jax.random.uniform(kx_big, (batch_big,), dtype=jnp.float32)
    out_big = jax.block_until_ready(
        random_or_learned_sinusoidal_pos_emb(x_big, weights, use_pallas=True))
    ref_big = _reference(x_big, weights)
    assert out_big.shape == (batch_big, 1 + dim), out_big.shape
    assert jnp.allclose(out_big, ref_big, atol=1e-4, rtol=1e-4), float(
        jnp.max(jnp.abs(out_big - ref_big)))

    # --- Small block_rows override: exercises the ragged (partial) last block.
    out_rag = jax.block_until_ready(
        random_or_learned_sinusoidal_pos_emb(x_big, weights, use_pallas=True,
                                             block_rows=512))
    assert out_rag.shape == (batch_big, 1 + dim), out_rag.shape
    assert jnp.allclose(out_rag, ref_big, atol=1e-4, rtol=1e-4), float(
        jnp.max(jnp.abs(out_rag - ref_big)))

    print("KERNEL_OK")
</pallas_src>

<mosaic_0001>
module attributes {stable_mosaic.version = 11 : i64} {
  func.func @_sinusoidal_kernel(%arg0: i32, %arg1: memref<8x1xf32, #tpu.memory_space<vmem>>, %arg2: memref<1x17xf32, #tpu.memory_space<vmem>>, %arg3: memref<1x17xf32, #tpu.memory_space<vmem>>, %arg4: memref<8x17xf32, #tpu.memory_space<vmem>>) attributes {dimension_semantics = [#tpu.dimension_semantics<parallel>], iteration_bounds = array<i64: 1>, scalar_prefetch = 0 : i64, scratch_operands = 0 : i64, tpu.core_type = #tpu.core_type<tc>, window_params = [{transform_indices = @transform_0, window_bounds = array<i64: 8, 1>}, {pipeline_mode = #tpu.pipeline_mode<synchronous>, transform_indices = @transform_1, window_bounds = array<i64: 1, 17>}, {pipeline_mode = #tpu.pipeline_mode<synchronous>, transform_indices = @transform_2, window_bounds = array<i64: 1, 17>}, {transform_indices = @transform_3, window_bounds = array<i64: 8, 17>}]} {
    %c0 = arith.constant 0 : index
    %c0_0 = arith.constant 0 : index
    %0 = vector.load %arg1[%c0, %c0_0] : memref<8x1xf32, #tpu.memory_space<vmem>>, vector<8x1xf32>
    %c0_1 = arith.constant 0 : index
    %c0_2 = arith.constant 0 : index
    %1 = vector.load %arg2[%c0_1, %c0_2] : memref<1x17xf32, #tpu.memory_space<vmem>>, vector<1x17xf32>
    %2 = vector.broadcast %0 : vector<8x1xf32> to vector<8x17xf32>
    %3 = vector.broadcast %1 : vector<1x17xf32> to vector<8x17xf32>
    %4 = arith.mulf %2, %3 : vector<8x17xf32>
    %c0_3 = arith.constant 0 : index
    %c0_4 = arith.constant 0 : index
    %5 = vector.load %arg3[%c0_3, %c0_4] : memref<1x17xf32, #tpu.memory_space<vmem>>, vector<1x17xf32>
    %6 = vector.broadcast %5 : vector<1x17xf32> to vector<8x17xf32>
    %7 = arith.addf %4, %6 : vector<8x17xf32>
    %8 = math.sin %7 : vector<8x17xf32>
    %9 = tpu.iota {dimensions = array<i32: 1>} : vector<8x17xi32>
    %c0_i32 = arith.constant 0 : i32
    %10 = vector.broadcast %c0_i32 : i32 to vector<8x17xi32>
    %11 = arith.cmpi eq, %9, %10 : vector<8x17xi32>
    %12 = vector.shape_cast %0 : vector<8x1xf32> to vector<8x1xf32>
    %13 = vector.broadcast %12 : vector<8x1xf32> to vector<8x17xf32>
    %14 = arith.select %11, %13, %8 : vector<8x17xi1>, vector<8x17xf32>
    %c0_5 = arith.constant 0 : index
    %c0_6 = arith.constant 0 : index
    %15 = vector.load %arg4[%c0_5, %c0_6] : memref<8x17xf32, #tpu.memory_space<vmem>>, vector<8x17xf32>
    tpu.vector_store %arg4[%c0_5, %c0_6], %14 {strides = array<i32>} : memref<8x17xf32, #tpu.memory_space<vmem>>, vector<8x17xf32>,
    return
  }
  func.func @transform_0(%arg0: i32) -> (i32, i32) {
    %c0_i32 = arith.constant 0 : i32
    %c0_i32_0 = arith.constant 0 : i32
    return %arg0, %c0_i32 : i32, i32
  }
  func.func @transform_1(%arg0: i32) -> (i32, i32) {
    %c0_i32 = arith.constant 0 : i32
    %c0_i32_0 = arith.constant 0 : i32
    %c0_i32_1 = arith.constant 0 : i32
    return %c0_i32, %c0_i32_0 : i32, i32
  }
  func.func @transform_2(%arg0: i32) -> (i32, i32) {
    %c0_i32 = arith.constant 0 : i32
    %c0_i32_0 = arith.constant 0 : i32
    %c0_i32_1 = arith.constant 0 : i32
    return %c0_i32, %c0_i32_0 : i32, i32
  }
  func.func @transform_3(%arg0: i32) -> (i32, i32) {
    %c0_i32 = arith.constant 0 : i32
    %c0_i32_0 = arith.constant 0 : i32
    return %arg0, %c0_i32 : i32, i32
  }
}

</mosaic_0001>

<bundles_post_ra>
// kernel: tpu_custom_call.1
= control target key start
LH: loop header
LB: loop body
LE: loop exit
PB: predicated region body
PF: predicated region fallthrough
CT: control target
= control target key end

     0   :  { %v206_v1 = vmov 0   ;;  %s271_s0 = inlined_call_operand.vmem [shape: f32[8,1], index: 0, kind: input, shape index: {}]   ;;  %s272_s1 = inlined_call_operand.vmem [shape: f32[1,17], index: 1, kind: input, shape index: {}]   ;;  %s273_s2 = inlined_call_operand.vmem [shape: f32[1,17], index: 2, kind: input, shape index: {}]   ;;  %s274_s3 = inlined_call_operand.hbm [shape: f32[8,17], index: 3, kind: output, shape index: {}]  }
   0x1   :  { %v15_v0 = vld [vmem:[%s271_s0] sm:$0xff]  ;;  %179 = vset.pattern.permute.xlu0 %v206_v1 }
   0x2   :  { %19 = vperm.xlu0 %179, %v15_v0  }
   0x3   :  { %8 = vsyncpa [#allocation3], 0  ;;  %v161_v2 = vld [vmem:[%s272_s1] ss:$0 sm:$0xff]  ;;  %v207_v17 = vmov 683565275  }
   0x4   :  { %v162_v3 = vld [vmem:[%s273_s2] ss:$0 sm:$0xff]  ;;  %v208_v19 = vmov 2475754826   ;;  %v209_v22 = vmov 2131351028  }
   0x5   :  { %v210_v25 = vmov 2102212464   ;;  %v211_v28 = vmov 920167782   ;;  %v212_v31 = vmov 1326507024  }
   0x6   :  { %s213_s0 = smov [#allocation2]   ;;  %vm145_vm14 = vcmask 138240  }
   0x7   :  { %s153_s1 = sshll.u32 %s213_s0, 4  ;;  %s154_s1 = int_to_ptr.vmem [resolvable:$true] %s153_s1 }
   0x8   :  { %s184_s2 = scalar_lea.vmem %s154_s1, 128  ;;  %p189_p1 = scmp.lt.s32.totalorder %s154_s1, %s154_s1 }
   0x9   :  { %p185_p0 = scmp.ne.s32.totalorder %s154_s1, %s184_s2  ;;  %p190_p2 = scmp.lt.s32.totalorder %s184_s2, %s184_s2 }
   0xb   :  { %p191_p3 = por %p190_p2, %p189_p1 }
   0xd   :  { %p192_p4 = pnand %p191_p3, %p185_p0 }
  0x7d   :  { %v243_v4 = vpop.permute.xlu0 %19 }
  0x7e   :  { %v28_v5 = vmul.f32 %v161_v2, %v243_v4 }
  0x80   :  { %v246_v6 = vadd.f32 %v162_v3, %v28_v5 }
  0x82   :  { %v40_v7 = vand.u32 2139095040, %v246_v6  ;;  %v37_v11 = vand.u32 2147483647, %v246_v6  ;;  %vm39_vm7 = vcmp.lt.s32.totalorder %v246_v6, 0  ;;  %vm129_vm13 = vweird.f32 %v246_v6 }
  0x84   :  { %v41_v8 = vshrl.u32 %v40_v7, 23  ;;  %v44_v14 = vand.u32 8388607, %v37_v11  ;;  %vm38_vm8 = vcmp.le.f32.partialorder %v37_v11, 0.7853982 }
  0x86   :  { %v163_v9 = vadd.s32 4294967169, %v41_v8  ;;  %v45_v33 = vor.u32 8388608, %v44_v14 }
  0x88   :  { %v47_v10 = vadd.s32 1, %v163_v9  ;;  %v85_v47 = vshll.u32 %v45_v33, 8 }
  0x8a   :  { %vm48_vm0 = vcmp.gt.s32.totalorder %v47_v10, 0 }
  0x8b   :  { %v49_v12 = vsel %vm48_vm0, %v47_v10, 0 }
  0x8c   :  { %v51_v13 = vand.u32 31, %v49_v12  ;;  %v50_v16 = vshrl.u32 %v49_v12, 5 }
  0x8e   :  { %v52_v15 = vsub.s32 32, %v51_v13  ;;  %v54_v18 = vshll.u32 %v207_v17, %v51_v13  ;;  %v57_v20 = vshll.u32 %v208_v19, %v51_v13  ;;  %v60_v24 = vshll.u32 %v209_v22, %v51_v13 }
  0x8f   :  { %v63_v27 = vshll.u32 %v210_v25, %v51_v13  ;;  %v66_v30 = vshll.u32 %v211_v28, %v51_v13  ;;  %vm69_vm1 = vcmp.lt.s32.totalorder %v50_v16, 1  ;;  %vm72_vm2 = vcmp.lt.s32.totalorder %v50_v16, 4 }
  0x90   :  { %v55_v21 = vshrl.u32 %v208_v19, %v52_v15  ;;  %v58_v23 = vshrl.u32 %v209_v22, %v52_v15  ;;  %v61_v26 = vshrl.u32 %v210_v25, %v52_v15  ;;  %v64_v29 = vshrl.u32 %v211_v28, %v52_v15 }
  0x91   :  { %v67_v32 = vshrl.u32 %v212_v31, %v52_v15  ;;  %v53_v42 = vshrl.u32 %v207_v17, %v52_v15  ;;  %vm71_vm3 = vcmp.lt.s32.totalorder %v50_v16, 3  ;;  %vm70_vm4 = vcmp.lt.s32.totalorder %v50_v16, 2 }
  0x92   :  { %v56_v34 = vor.u32 %v55_v21, %v54_v18  ;;  %v59_v35 = vor.u32 %v58_v23, %v57_v20  ;;  %v62_v36 = vor.u32 %v61_v26, %v60_v24  ;;  %v65_v37 = vor.u32 %v64_v29, %v63_v27 }
  0x93   :  { %v68_v38 = vor.u32 %v67_v32, %v66_v30  ;;  %v141_v28 = vlaneseq }
  0x94   :  { %v74_v39 = vsel %vm72_vm2, %v62_v36, 2102212464  ;;  %v77_v40 = vsel %vm69_vm1, %v56_v34, %v59_v35  ;;  %v81_v41 = vsel %vm69_vm1, %v59_v35, %v62_v36  ;;  %v78_v43 = vsel %vm72_vm2, %v65_v37, 920167782 }
  0x95   :  { %v82_v44 = vsel %vm72_vm2, %v68_v38, 1326507024  ;;  %v79_v45 = vsel %vm71_vm3, %v62_v36, %v78_v43  ;;  %v73_v48 = vsel %vm69_vm1, %v53_v42, %v56_v34  ;;  %v75_v49 = vsel %vm71_vm3, %v59_v35, %v74_v39 }
  0x96   :  { %v83_v46 = vsel %vm71_vm3, %v65_v37, %v82_v44  ;;  %v80_v50 = vsel %vm70_vm4, %v77_v40, %v79_v45  ;;  %v76_v56 = vsel %vm70_vm4, %v73_v48, %v75_v49  ;;  %v142_v31 = vand.u32 127, %v141_v28 }
  0x97   :  { %v84_v51 = vsel %vm70_vm4, %v81_v41, %v83_v46  ;;  %v255_v54 = vmul.u32.u64.low %v85_v47, %v80_v50  ;;  %v256_v55 = vmul.u32.u64.high %v85_v47, %v80_v50, %v255_v54  ;;  %v92_v58 = vmul.u32 %v85_v47, %v76_v56 }
  0x98   :  { %v252_v52 = vmul.u32.u64.low %v85_v47, %v84_v51  ;;  %v253_v53 = vmul.u32.u64.high %v85_v47, %v84_v51, %v252_v52  ;;  %vm143_vm11 = vcmp.eq.s32.totalorder %v142_v31, 0 }
  0x99   :  { %v95_v57 = vadd.s32 1, %v256_v55 }
  0x9a   :  { %vm94_vm5 = vc.u32 %v253_v53, %v255_v54  ;;  %v93_v8 = vadd.s32 %v255_v54, %v253_v53 }
  0x9b   :  { %v96_v59 = vsel %vm94_vm5, %v95_v57, %v256_v55 }
  0x9c   :  { %v97_v60 = vadd.s32 %v96_v59, %v92_v58 }
  0x9e   :  { %v98_v61 = vadd.s32 536870912, %v97_v60 }
  0xa0   :  { %v99_v62 = vshrl.u32 %v98_v61, 30 }
  0xa2   :  { %v100_v63 = vshll.u32 %v99_v62, 30  ;;  %v123_v22 = vsub.s32 4, %v99_v62 }
  0xa4   :  { %v101_v0 = vsub.s32 %v97_v60, %v100_v63  ;;  %v124_v25 = vsel %vm39_vm7, %v123_v22, %v99_v62 }
  0xa5   :  { %v126_v26 = vsel %vm38_vm8, 0, %v124_v25 }
  0xa6   :  { %v103_v1 = vsub.s32 0, %v101_v0  ;;  %v130_v27 = vadd.s32 3, %v126_v26 }
  0xa8   :  { %v164_v2 = vmin.u32 %v103_v1, %v101_v0  ;;  %v131_v29 = vand.u32 3, %v130_v27 }
  0xaa   :  { %v105_v3 = vclz %v164_v2  ;;  %vm136_vm9 = vcmp.eq.s32.totalorder %v131_v29, 2  ;;  %vm133_vm10 = vcmp.eq.s32.totalorder %v131_v29, 0  ;;  %vm132_vm12 = vcmp.lt.s32.totalorder %v131_v29, 2 }
  0xac   :  { %v165_v5 = vadd.s32 4294967294, %v105_v3 }
  0xae   :  { %vm166_vm6 = vcmp.lt.s32.totalorder %v165_v5, 0 }
  0xaf   :  { %v108_v7 = vsel %vm166_vm6, 0, %v165_v5 }
  0xb0   :  { %v109_v9 = vsub.s32 32, %v108_v7  ;;  %v113_v10 = vsub.s32 4294967266, %v108_v7  ;;  %v110_v12 = vshll.u32 %v101_v0, %v108_v7 }
  0xb2   :  { %v111_v13 = vshrl.u32 %v93_v8, %v109_v9  ;;  %v114_v14 = vadd.s32 127, %v113_v10 }
  0xb4   :  { %v112_v15 = vor.u32 %v111_v13, %v110_v12  ;;  %v115_v16 = vshll.u32 %v114_v14, 23 }
  0xb6   :  { %v116_v17 = vor.u32 4788187, %v115_v16  ;;  %v119_v19 = vcvt.s32.f32 %v112_v15 }
  0xb8   :  { %v117_v18 = vand.u32 2147483647, %v116_v17 }
  0xba   :  { %v120_v20 = vmul.f32 %v119_v19, %v117_v18 }
  0xbc   :  { %v121_v21 = vxor.u32 2147483648, %v120_v20 }
  0xbe   :  { %v122_v23 = vsel %vm39_vm7, %v121_v21, %v120_v20 }
  0xbf   :  { %v125_v24 = vsel %vm38_vm8, %v246_v6, %v122_v23 }
  0xc0   :  { %180 = vcosq.f32 %v125_v24 }
  0xc1   :  { %182 = vsinq.f32 %v125_v24 }
  0xcd   :  { %v181_v30 = vpop.eup %180 }
  0xce   :  { %v183_v32 = vpop.eup %182  ;;  %v137_v33 = vxor.u32 2147483648, %v181_v30 }
  0xcf   :  { %v134_v34 = vxor.u32 2147483648, %v183_v32 }
  0xd0   :  { %v138_v35 = vsel %vm136_vm9, %v137_v33, %v183_v32 }
  0xd1   :  { %v135_v11 = vsel %vm133_vm10, %v181_v30, %v134_v34 }
  0xd2   :  { %v139_v36 = vsel %vm132_vm12, %v135_v11, %v138_v35 }
  0xd3   :  { %v140_v37 = vsel %vm129_vm13, nan, %v139_v36 }
  0xd4   :  { %v144_v38 = vsel %vm143_vm11, %v243_v4, %v140_v37 }
  0xd5   :  { %146 = vst.msk [vmem:[#allocation2] sm:$0xff] %vm145_vm14, %v144_v38 }
  0xd6   :  { %195 = shalt.err (!%p192_p4)
}
  0xd7   :  { %156 = dma.vmem_to_hbm [thread:$0]  %s154_s1, 128, %s274_s3, [#allocation3]  }
  0xd8   :  { %204 = dma.done.wait [#allocation3], 128  }
  0xd9   :  { %205 = vsyncadd [#allocation3], 4294967168 }
  0xda   :  { %160 = vsyncpa [#allocation3], 1 }

</bundles_post_ra>
